<compile_context>
chip_gen: v6e
topology: v6e:2x2x1
jax: 0.10.0
libtpu: 0.0.40
codegen_flags: <defaults>
</compile_context>

<pallas_src>
import functools

import jax
import jax.numpy as jnp
from jax.experimental import pallas as pl
from jax.experimental.pallas import tpu as pltpu


def _se_kernel(x_ref, w1t_ref, b1_ref, w2t_ref, b2_ref, o_ref, *, hw, hw_pad):
    """One grid step: a (TB, C, HW_pad) batch-tile slab.

    x_ref  : (TB, C, HW_pad)   activations (spatial dims flattened + padded)
    w1t_ref: (C, C)            fc1 weight, pre-transposed to (in, out)
    b1_ref : (1, C)            fc1 bias
    w2t_ref: (C, C)            fc2 weight, pre-transposed to (in, out)
    b2_ref : (1, C)            fc2 bias
    o_ref  : (TB, C, HW_pad)
    """
    x = x_ref[...]                                          # (TB, C, HWp)

    # squeeze: 0.5 * mean + 0.5 * amax over the spatial (lane) axis,
    # accumulated in f32.  Padded lanes are masked out (trace-time branch).
    if hw == hw_pad:
        s = jnp.sum(x, axis=-1, dtype=jnp.float32)          # (TB, C)
        mx = jnp.max(x, axis=-1).astype(jnp.float32)        # (TB, C)
    else:
        lane = jax.lax.broadcasted_iota(jnp.int32, x.shape, 2)
        valid = lane < hw
        s = jnp.sum(jnp.where(valid, x, 0.0), axis=-1, dtype=jnp.float32)
        mx = jnp.max(jnp.where(valid, x, -jnp.inf), axis=-1).astype(jnp.float32)
    se = 0.5 * (s * (1.0 / hw) + mx)                        # (TB, C) f32

    # fc1 (1x1 conv == channel matmul, batched over TB on the MXU) + ReLU
    h = jnp.dot(se, w1t_ref[...], preferred_element_type=jnp.float32)
    h = jnp.maximum(h + b1_ref[...], 0.0)                   # act = ReLU
    # fc2 + sigmoid gate (sigmoid runs on the EUP slot)
    g = jnp.dot(h, w2t_ref[...], preferred_element_type=jnp.float32)
    gate = jax.nn.sigmoid(g + b2_ref[...])                  # (TB, C)

    # broadcast multiply back onto the full spatial slab
    o_ref[...] = (x * gate[:, :, None]).astype(o_ref.dtype)


def se_module_forward(x, w1, b1, w2, b2, *, vmem_budget_bytes=48 * 1024 * 1024):
    """x: (B, C, H, W).  w1, w2: (C, C).  b1, b2: (C,).  Returns (B, C, H, W)."""
    B, C, H, W = x.shape
    HW = H * W
    HW_pad = pl.cdiv(HW, 128) * 128                 # lane-dense last dim

    dtype_bytes = jnp.dtype(x.dtype).itemsize
    slab_bytes = C * HW_pad * dtype_bytes           # one batch element, one buf
    weight_bytes = 2 * C * C * 4 + 2 * C * 4

    # Batch-tile size: 2 input bufs + 2 output bufs per element must fit budget.
    budget = max(vmem_budget_bytes - weight_bytes, 4 * slab_bytes)
    tb = max(1, budget // (4 * slab_bytes))
    tb = int(min(tb, B))
    if B >= 2:
        # keep at least 2 grid steps so v7x's 2 TensorCores both get work
        tb = int(min(tb, pl.cdiv(B, 2)))
    B_pad = pl.cdiv(B, tb) * tb
    grid_b = B_pad // tb

    # Explicit scoped-VMEM limit sized to actual need (v5e default is only 16 MiB).
    need = 4 * tb * slab_bytes + weight_bytes + (2 << 20)
    vmem_limit = int(min(max(need, 32 << 20), 64 << 20))

    x_flat = x.reshape(B, C, HW)
    pad_b = B_pad - B
    pad_hw = HW_pad - HW
    if pad_b or pad_hw:
        x_flat = jnp.pad(x_flat, ((0, pad_b), (0, 0), (0, pad_hw)))

    # Pre-transpose weights to (in, out) and make biases 2-D rows.
    w1t = jnp.asarray(w1).T
    w2t = jnp.asarray(w2).T
    b1_row = b1.reshape(1, C)
    b2_row = b2.reshape(1, C)

    out_flat = pl.pallas_call(
        functools.partial(_se_kernel, hw=HW, hw_pad=HW_pad),
        out_shape=jax.ShapeDtypeStruct((B_pad, C, HW_pad), x.dtype),
        grid_spec=pltpu.PrefetchScalarGridSpec(
            num_scalar_prefetch=0,
            grid=(grid_b,),
            in_specs=[
                pl.BlockSpec((tb, C, HW_pad), lambda b: (b, 0, 0)),  # x slab
                pl.BlockSpec((C, C), lambda b: (0, 0)),              # w1^T
                pl.BlockSpec((1, C), lambda b: (0, 0)),              # b1
                pl.BlockSpec((C, C), lambda b: (0, 0)),              # w2^T
                pl.BlockSpec((1, C), lambda b: (0, 0)),              # b2
            ],
            out_specs=pl.BlockSpec((tb, C, HW_pad), lambda b: (b, 0, 0)),
        ),
        compiler_params=pltpu.CompilerParams(
            dimension_semantics=("parallel",),
            vmem_limit_bytes=vmem_limit),
    )(x_flat, w1t, b1_row, w2t, b2_row)

    return out_flat[:B, :, :HW].reshape(B, C, H, W)


def se_module_reference(x, w1, b1, w2, b2):
    """Pure-JAX reference mirroring the PyTorch forward (act = ReLU)."""
    x_se = jnp.mean(x, axis=(2, 3), keepdims=True)
    x_se = 0.5 * x_se + 0.5 * jnp.max(x, axis=(2, 3), keepdims=True)
    x_se = jnp.einsum('oc,bcxy->boxy', w1, x_se) + b1[None, :, None, None]
    x_se = jnp.maximum(x_se, 0.0)
    x_se = jnp.einsum('oc,bcxy->boxy', w2, x_se) + b2[None, :, None, None]
    return x * jax.nn.sigmoid(x_se)


if __name__ == "__main__":
    B, C, H, W = 2, 4, 16, 16

    key = jax.random.PRNGKey(0)
    kx, kw1, kb1, kw2, kb2 = jax.random.split(key, 5)

    x = jax.random.normal(kx, (B, C, H, W), dtype=jnp.float32)
    # nn.Conv2d(channels, channels, kernel_size=1) -> weight (C, C), bias (C,)
    w1 = jax.random.normal(kw1, (C, C), dtype=jnp.float32) * 0.5
    b1 = jax.random.normal(kb1, (C,), dtype=jnp.float32) * 0.1
    w2 = jax.random.normal(kw2, (C, C), dtype=jnp.float32) * 0.5
    b2 = jax.random.normal(kb2, (C,), dtype=jnp.float32) * 0.1

    out = se_module_forward(x, w1, b1, w2, b2)
    out = jax.block_until_ready(out)

    ref = se_module_reference(x, w1, b1, w2, b2)
    assert out.shape == (B, C, H, W)
    assert jnp.allclose(out, ref, atol=1e-5, rtol=1e-5), "mismatch vs reference"

    print("KERNEL_OK")
</pallas_src>

<mosaic_0001>
module attributes {stable_mosaic.version = 11 : i64} {
  func.func @_se_kernel(%arg0: i32, %arg1: memref<1x4x256xf32, #tpu.memory_space<vmem>>, %arg2: memref<4x4xf32, #tpu.memory_space<vmem>>, %arg3: memref<1x4xf32, #tpu.memory_space<vmem>>, %arg4: memref<4x4xf32, #tpu.memory_space<vmem>>, %arg5: memref<1x4xf32, #tpu.memory_space<vmem>>, %arg6: memref<1x4x256xf32, #tpu.memory_space<vmem>>) attributes {dimension_semantics = [#tpu.dimension_semantics<parallel>], iteration_bounds = array<i64: 2>, scalar_prefetch = 0 : i64, scratch_operands = 0 : i64, tpu.core_type = #tpu.core_type<tc>, window_params = [{transform_indices = @transform_0, window_bounds = array<i64: 1, 4, 256>}, {pipeline_mode = #tpu.pipeline_mode<synchronous>, transform_indices = @transform_1, window_bounds = array<i64: 4, 4>}, {pipeline_mode = #tpu.pipeline_mode<synchronous>, transform_indices = @transform_2, window_bounds = array<i64: 1, 4>}, {pipeline_mode = #tpu.pipeline_mode<synchronous>, transform_indices = @transform_3, window_bounds = array<i64: 4, 4>}, {pipeline_mode = #tpu.pipeline_mode<synchronous>, transform_indices = @transform_4, window_bounds = array<i64: 1, 4>}, {transform_indices = @transform_5, window_bounds = array<i64: 1, 4, 256>}]} {
    %c0 = arith.constant 0 : index
    %c0_0 = arith.constant 0 : index
    %c0_1 = arith.constant 0 : index
    %0 = vector.load %arg1[%c0, %c0_0, %c0_1] : memref<1x4x256xf32, #tpu.memory_space<vmem>>, vector<1x4x256xf32>
    %cst = arith.constant dense<0.000000e+00> : vector<1x4xf32>
    %1 = vector.multi_reduction <add>, %0, %cst [2] : vector<1x4x256xf32> to vector<1x4xf32>
    %cst_2 = arith.constant dense<0xFF800000> : vector<1x4xf32>
    %2 = vector.multi_reduction <maximumf>, %0, %cst_2 [2] : vector<1x4x256xf32> to vector<1x4xf32>
    %cst_3 = arith.constant 3.906250e-03 : f32
    %3 = vector.broadcast %cst_3 : f32 to vector<1x4xf32>
    %4 = arith.mulf %1, %3 : vector<1x4xf32>
    %5 = arith.addf %4, %2 : vector<1x4xf32>
    %cst_4 = arith.constant 5.000000e-01 : f32
    %6 = vector.broadcast %cst_4 : f32 to vector<1x4xf32>
    %7 = arith.mulf %6, %5 : vector<1x4xf32>
    %c0_5 = arith.constant 0 : index
    %c0_6 = arith.constant 0 : index
    %8 = vector.load %arg2[%c0_5, %c0_6] : memref<4x4xf32, #tpu.memory_space<vmem>>, vector<4x4xf32>
    %cst_7 = arith.constant dense<0.000000e+00> : vector<1x4xf32>
    %9 = tpu.matmul %7, %8, %cst_7 {dimension_numbers = #tpu.dot_dimension_numbers<[1], [0], [0], [1], [0, 0, 1, 1], [], []>} : vector<1x4xf32>, vector<4x4xf32>, vector<1x4xf32> -> vector<1x4xf32>
    %c0_8 = arith.constant 0 : index
    %c0_9 = arith.constant 0 : index
    %10 = vector.load %arg3[%c0_8, %c0_9] : memref<1x4xf32, #tpu.memory_space<vmem>>, vector<1x4xf32>
    %11 = arith.addf %9, %10 : vector<1x4xf32>
    %cst_10 = arith.constant 0.000000e+00 : f32
    %12 = vector.broadcast %cst_10 : f32 to vector<1x4xf32>
    %13 = arith.maximumf %11, %12 : vector<1x4xf32>
    %c0_11 = arith.constant 0 : index
    %c0_12 = arith.constant 0 : index
    %14 = vector.load %arg4[%c0_11, %c0_12] : memref<4x4xf32, #tpu.memory_space<vmem>>, vector<4x4xf32>
    %cst_13 = arith.constant dense<0.000000e+00> : vector<1x4xf32>
    %15 = tpu.matmul %13, %14, %cst_13 {dimension_numbers = #tpu.dot_dimension_numbers<[1], [0], [0], [1], [0, 0, 1, 1], [], []>} : vector<1x4xf32>, vector<4x4xf32>, vector<1x4xf32> -> vector<1x4xf32>
    %c0_14 = arith.constant 0 : index
    %c0_15 = arith.constant 0 : index
    %16 = vector.load %arg5[%c0_14, %c0_15] : memref<1x4xf32, #tpu.memory_space<vmem>>, vector<1x4xf32>
    %17 = arith.addf %15, %16 : vector<1x4xf32>
    %18 = arith.negf %17 : vector<1x4xf32>
    %19 = math.exp %18 : vector<1x4xf32>
    %cst_16 = arith.constant 1.000000e+00 : f32
    %20 = vector.broadcast %cst_16 : f32 to vector<1x4xf32>
    %21 = arith.addf %20, %19 : vector<1x4xf32>
    %22 = arith.divf %20, %21 : vector<1x4xf32>
    %23 = vector.shape_cast %22 : vector<1x4xf32> to vector<1x4x1xf32>
    %24 = vector.broadcast %23 : vector<1x4x1xf32> to vector<1x4x256xf32>
    %25 = arith.mulf %0, %24 : vector<1x4x256xf32>
    %c0_17 = arith.constant 0 : index
    %c0_18 = arith.constant 0 : index
    %c0_19 = arith.constant 0 : index
    %26 = vector.load %arg6[%c0_17, %c0_18, %c0_19] : memref<1x4x256xf32, #tpu.memory_space<vmem>>, vector<1x4x256xf32>
    tpu.vector_store %arg6[%c0_17, %c0_18, %c0_19], %25 {strides = array<i32>} : memref<1x4x256xf32, #tpu.memory_space<vmem>>, vector<1x4x256xf32>,
    return
  }
  func.func @transform_0(%arg0: i32) -> (i32, i32, i32) {
    %c0_i32 = arith.constant 0 : i32
    %c0_i32_0 = arith.constant 0 : i32
    %c0_i32_1 = arith.constant 0 : i32
    return %arg0, %c0_i32, %c0_i32_0 : i32, i32, i32
  }
  func.func @transform_1(%arg0: i32) -> (i32, i32) {
    %c0_i32 = arith.constant 0 : i32
    %c0_i32_0 = arith.constant 0 : i32
    %c0_i32_1 = arith.constant 0 : i32
    return %c0_i32, %c0_i32_0 : i32, i32
  }
  func.func @transform_2(%arg0: i32) -> (i32, i32) {
    %c0_i32 = arith.constant 0 : i32
    %c0_i32_0 = arith.constant 0 : i32
    %c0_i32_1 = arith.constant 0 : i32
    return %c0_i32, %c0_i32_0 : i32, i32
  }
  func.func @transform_3(%arg0: i32) -> (i32, i32) {
    %c0_i32 = arith.constant 0 : i32
    %c0_i32_0 = arith.constant 0 : i32
    %c0_i32_1 = arith.constant 0 : i32
    return %c0_i32, %c0_i32_0 : i32, i32
  }
  func.func @transform_4(%arg0: i32) -> (i32, i32) {
    %c0_i32 = arith.constant 0 : i32
    %c0_i32_0 = arith.constant 0 : i32
    %c0_i32_1 = arith.constant 0 : i32
    return %c0_i32, %c0_i32_0 : i32, i32
  }
  func.func @transform_5(%arg0: i32) -> (i32, i32, i32) {
    %c0_i32 = arith.constant 0 : i32
    %c0_i32_0 = arith.constant 0 : i32
    %c0_i32_1 = arith.constant 0 : i32
    return %arg0, %c0_i32, %c0_i32_0 : i32, i32, i32
  }
}

</mosaic_0001>

<bundles_post_ra>
// kernel: tpu_custom_call.1
= control target key start
LH: loop header
LB: loop body
LE: loop exit
PB: predicated region body
PF: predicated region fallthrough
CT: control target
= control target key end

     0   :  { %10 = vsyncpa [#allocation3], 0  ;;  %s1002_s0 = inlined_call_operand.hbm [shape: f32[2,4,256], index: 0, kind: input, shape index: {}]   ;;  %s1003_s1 = inlined_call_operand.hbm [shape: f32[4,4], index: 1, kind: input, shape index: {}]   ;;  %s1004_s2 = inlined_call_operand.vmem [shape: f32[1,4], index: 2, kind: input, shape index: {}]   ;;  %s1005_s3 = inlined_call_operand.vmem [shape: f32[4,4], index: 3, kind: input, shape index: {}]   ;;  %s1006_s4 = inlined_call_operand.vmem [shape: f32[1,4], index: 4, kind: input, shape index: {}]   ;;  %s1007_s5 = inlined_call_operand.hbm [shape: f32[2,4,256], index: 5, kind: output, shape index: {}]  }
   0x1   :  { %12 = vsyncpa [#allocation3 + $0x1], 0 }
   0x2   :  { %13 = vsyncpa [#allocation6], 0 }
   0x3   :  { %14 = vsyncpa [#allocation4], 0 }
   0x4   :  { %16 = vsyncpa [#allocation4 + $0x1], 0  ;;  %s817_s18 = smov 0   ;;  %s819_s19 = smov 0  }
   0x5   :  { %s821_s20 = smov 0   ;;  %s823_s21 = smov 0  }
   0x6 LB: > { %s838_s22 = sadd.s32 4294967295, %s779_s21   ;;  %s555_s23 = sadd.s32 4294967294, %s779_s21   ;;  %s779_s21 = sphi %s823_s21, %s1030_s21   ;;  %s775_s20 = sphi %s821_s20, %s1029_s20   ;;  %s771_s19 = sphi %s819_s19, %s1028_s19   ;;  %s767_s18 = sphi %s817_s18, %s1027_s18  }
   0x7   : > { %p42_p0 = scmp.ne.s32.totalorder %s771_s19, %s767_s18  ;;  %p1008_p1 = scmp.eq.s32.totalorder %s838_s22, 0 }
   0x8   : > { %p156_p3 = scmp.eq.s32.totalorder %s555_s23, 1  ;;  %p556_p5 = scmp.ge.s32.totalorder %s779_s21, 1 }
   0x9   : > { %p847_p4 = por %p1008_p1, %p42_p0  ;;  %p163_p7 = scmp.lt.s32.totalorder %s779_s21, 3 }
   0xa   : > { %p852_p6 = por %p156_p3, %p42_p0  ;;  %s781_s27 = smov [#allocation5]  }
   0xb   : > { %s1012_s24 = scalar_select %p847_p4, 1, 0 }
   0xc   : > { %s1013_s25 = scalar_select %p852_p6, 1, 0 }
   0xd   : > { %p857_p8 = pnand %p556_p5, %p163_p7  ;;  %s176_s28 = sshll.u32 %s781_s27, 4  ;;  %s177_s28 = int_to_ptr.vmem [resolvable:$true] %s176_s28 }
   0xe   : > { %s865_s29 = sadd.s32 1, %s779_s21   ;;  %s29_s8 = sadd.s32 1, %s775_s20 }
   0xf   : > { %s1014_s26 = scalar_select %p857_p8, 1, 0 }
  0x10   : > { %p600_p10 = pneg %p857_p8  ;;  %s26_s6 = ssub.s32 %s779_s21, %s865_s29 }
  0x11   : > { %p875_p12 = scmp.eq.s32.totalorder %s26_s6, 0  ;;  %p36_p13 = scmp.ne.s32.totalorder %s775_s20, %s771_s19 }
  0x12   : > { %p869_p11 = pnand %p600_p10, %p1008_p1  ;;  %s668_s9 = scalar_lea.vmem %s177_s28, 64 }
  0x13   : > { %p669_p3 = scmp.ne.s32.totalorder %s177_s28, %s668_s9  ;;  %p676_p9 = scmp.lt.s32.totalorder %s177_s28, %s177_s28 }
  0x14   : > { %p659_p0 = pneg %p869_p11  ;;  %p677_p2 = scmp.lt.s32.totalorder %s668_s9, %s668_s9 }
  0x16   : > { %p671_p5 = pnand %p669_p3, %p659_p0  ;;  %p678_p10 = por %p677_p2, %p676_p9 }
  0x18   : > { %p672_p7 = pneg %p671_p5 }
  0x1a   : > { %p679_p1 = pnand %p678_p10, %p672_p7 }
  0x1c   : > { %682 = shalt.err (!%p679_p1)
}
  0x1d   : > { %603 = dma.hbm_to_vmem [thread:$0]  (!%p869_p11), %s1003_s1, 64, %s177_s28, [#allocation6]  }
  0x1e   : > { %s892_s12 = scalar_select %p875_p12, %s775_s20, %s29_s8  }
  0x1f   : > { %p37_p1 = scmp.eq.s32.totalorder %s779_s21, 0  ;;  %p1017_p2 = scmp.eq.s32.totalorder %s838_s22, 1 }
  0x20   : > { %p613_p0 = scmp.lt.s32.totalorder %s779_s21, 2  ;;  %s196_s14 = sand.u32 1, %s775_s20  }
  0x21   : > { %p900_p9 = por %p1017_p2, %p36_p13  ;;  %p38_p3 = por %p37_p1, %p36_p13 }
  0x22   : > { %s559_s15 = sshll.u32 %s196_s14, 3  ;;  %s576_s16 = sshll.u32 %s779_s21, 7 }
  0x23   : > { %s1018_s13 = scalar_select %p900_p9, 1, 0 }
  0x24   : > { %s913_s27 = scalar_lea.hbm %s1002_s0, %s576_s16  ;;  %s200_s28 = scalar_lea.vmem [#allocation2], %s559_s15 }
  0x25   : > { %s208_s30 = sshll.u32 %s200_s28, 4  ;;  %p915_p11 = pnand %p613_p0, %p38_p3  ;;  %s209_s30 = int_to_ptr.vmem [resolvable:$true] %s208_s30 }
  0x26   : > { %s197_s7 = scalar_lea.sflag [#allocation3], %s196_s14  ;;  %s683_s8 = scalar_lea.hbm %s913_s27, 128 }
  0x27   : > { %p684_p12 = scmp.ne.s32.totalorder %s913_s27, %s683_s8  ;;  %p685_p13 = pneg %p915_p11 }
  0x28   : > { %s688_s11 = scalar_lea.hbm %s1002_s0, 256  ;;  %p689_p10 = scmp.lt.s32.totalorder %s913_s27, %s1002_s0 }
  0x29   : > { %p686_p5 = pnand %p685_p13, %p684_p12  ;;  %p690_p1 = scmp.lt.s32.totalorder %s688_s11, %s683_s8 }
  0x2b   : > { %p687_p7 = pneg %p686_p5  ;;  %p691_p2 = por %p690_p1, %p689_p10 }
  0x2d   : > { %p692_p0 = pnand %p691_p2, %p687_p7 }
  0x2f   : > { %695 = shalt.err (!%p692_p0)
}
  0x30   : > { %s696_s17 = scalar_lea.vmem %s209_s30, 128  ;;  %s782_s14 = smov [#allocation2]  }
  0x31   : > { %p697_p3 = scmp.ne.s32.totalorder %s209_s30, %s696_s17  ;;  %s701_s23 = sshll.u32 %s782_s14, 4  ;;  %s702_s23 = int_to_ptr.vmem [resolvable:$false] %s701_s23 }
  0x32   : > { %s703_s28 = scalar_lea.vmem %s702_s23, 256  ;;  %p704_p12 = scmp.lt.s32.totalorder %s209_s30, %s702_s23 }
  0x33   : > { %p699_p6 = pnand %p697_p3, %p685_p13  ;;  %p705_p5 = scmp.lt.s32.totalorder %s703_s28, %s696_s17 }
  0x35   : > { %p700_p9 = pneg %p699_p6  ;;  %p706_p4 = por %p705_p5, %p704_p12 }
  0x37   : > { %p707_p8 = pnand %p706_p4, %p700_p9 }
  0x39   : > { %710 = shalt.err (!%p707_p8)
}
  0x3a   : > { %607 = dma.hbm_to_vmem [thread:$0]  (!%p915_p11), %s913_s27, 128, %s209_s30, %s197_s7  }
  0x3b   : > { %p1020_p7 = scmp.ne.s32.totalorder %s1014_s26, 0 }
  0x3c   : > { %s936_s8 = sand.u32 (!%p1020_p7), 1, %s771_s19   ;;  %p1021_p4 = scmp.ne.s32.totalorder (!%p1020_p7), %s1012_s24, 0 }
  0x3d   : > { %217 = sbr.rel (%p1020_p7) target bundleno = 782 (0x30e), region = 40  ;;  %s563_s9 = sshll.u32 (!%p1020_p7), %s936_s8, 3 }
  0x3e   : > { %s220_s10 = scalar_lea.sflag (!%p1020_p7), [#allocation3], %s936_s8  ;;  %s223_s11 = scalar_lea.vmem (!%p1020_p7), [#allocation2], %s563_s9 }
  0x42   : > { %754 = dma.done.wait (%p1021_p4), %s220_s10, 128  }
  0x43   : > { %756 = vsyncadd (%p1021_p4), %s220_s10, 4294967168  ;;  %p1022_p6 = scmp.eq.s32.totalorder %s838_s22, 0 }
  0x45   : > { %758 = dma.done.wait (%p1022_p6), [#allocation6], 64   ;;  %p1023_p8 = pmov %p1022_p6 }
  0x46   : > { %vm258_vm0 = vcmask 1043456   ;;  %v254_v0 = vld [vmem:[%s223_s11] sm:$0xff]  ;;  %v783_v8 = vmov 0.0   ;;  %v272_v9 = vld [vmem:[#allocation5] sm:$0xf]  ;;  %vm784_vm1 = vmmov 0   ;;  %v275_v10 = vlaneseq }
  0x47   : > { %760 = vsyncadd (%p1023_p8), [#allocation6], 4294967232  ;;  %v256_v1 = vcombine.high %v254_v0, %v254_v0  ;;  %v259_v2 = vsel %vm258_vm0, %v254_v0, 0.0  ;;  %v264_v4 = vsel %vm258_vm0, %v254_v0, -inf  ;;  %582 = vmatprep.subr.mxu0 %v783_v8  ;;  %587 = vmatprep.subr.mxu1 %v783_v8  ;;  %vm281_vm2 = vcmask 31744   ;;  %s577_s16 = sshll.u32 %s838_s22, 7 }
  0x48   : > { %583 = vmatpush3.msk.msra.mxu0 %vm258_vm0, %v272_v9  ;;  %584 = vmatprep.mubr.msk.f32.mxu0 %vm784_vm1, %v783_v8  ;;  %v276_v12 = vand.u32 127, %v275_v10  ;;  %v278_v13 = vshrl.u32 %v275_v10, 7  ;;  %v358_v20 = vld [vmem:[%s1005_s3] sm:$0xf]  ;;  %v785_v36 = vmov 839922192   ;;  %s473_s28 = scalar_lea.hbm %s1007_s5, %s577_s16 }
  0x49   : > { %v260_v3 = vsel %vm258_vm0, %v256_v1, 0.0  ;;  %v265_v5 = vsel %vm258_vm0, %v256_v1, -inf  ;;  %589 = vmatprep.mubr.msk.f32.mxu1 %vm784_vm1, %v783_v8  ;;  %588 = vmatpush3.msk.msra.mxu1 %vm258_vm0, %v358_v20  ;;  %v273_v21 = vld [vmem:[%s1004_s2] sm:$0x1]  ;;  %v451_v37 = vunpack.c.l.s4 %v785_v36  ;;  %s253_s15 = scalar_lea.vmem [#allocation7], %s563_s9  ;;  %s461_s10 = scalar_lea.sflag [#allocation4], %s936_s8 }
  0x4a   : > { %v261_v6 = vadd.f32 %v260_v3, %v259_v2  ;;  %v266_v7 = vmax.f32 %v264_v4, %v265_v5  ;;  %v279_v16 = vsub.s32 %v276_v12, %v278_v13  ;;  %v359_v26 = vld [vmem:[%s1006_s4] sm:$0x1]  ;;  %v444_v33 = vsub.s32 0, %v278_v13  ;;  %s475_s17 = sshll.u32 %s253_s15, 4  ;;  %p1024_p11 = scmp.ne.s32.totalorder %s1018_s13, 0  ;;  %s476_s17 = int_to_ptr.vmem [resolvable:$true] %s475_s17 }
  0x4b   : > { %v452_v38 = vunpack.c.0.s8 %v451_v37  ;;  %s711_s11 = scalar_lea.vmem %s476_s17, 128  ;;  %s786_s24 = smov [#allocation7]  }
  0x4c   : > { %262 = vadd.xlane.f32.xlu0 %v261_v6  ;;  %p712_p9 = scmp.ne.s32.totalorder %s476_s17, %s711_s11  ;;  %s715_s26 = sshll.u32 %s786_s24, 4  ;;  %s716_s26 = int_to_ptr.vmem [resolvable:$false] %s715_s26 }
  0x4d   : > { %v455_v39 = vsub.s32 %v452_v38, %v278_v13  ;;  %s717_s22 = scalar_lea.vmem %s716_s26, 256  ;;  %p718_p1 = scmp.lt.s32.totalorder %s476_s17, %s716_s26 }
  0x4e   : > { %p713_p13 = pnand %p712_p9, %p1024_p11  ;;  %p719_p2 = scmp.lt.s32.totalorder %s717_s22, %s711_s11 }
  0x50   : > { %267 = vmax.xlane.f32.xlu0 %v266_v7  ;;  %p714_p10 = pneg %p713_p13  ;;  %p720_p0 = por %p719_p2, %p718_p1 }
  0x52   : > { %p721_p3 = pnand %p720_p0, %p714_p10 }
  0xd5   : > { %v263_v11 = vpop.xlane.xlu0 %262 }
  0xd6   : > { %v269_v14 = vmul.f32 0.00390625, %v263_v11 }
  0xd9   : > { %v268_v15 = vpop.xlane.xlu0 %267 }
  0xda   : > { %v270_v17 = vadd.f32 %v269_v14, %v268_v15 }
  0xdc   : > { %v271_v18 = vmul.f32 0.5, %v270_v17 }
  0xde   : > { %v280_v19 = vrot.slane %v271_v18, %v279_v16 }
  0xe0   : > { %585 = vmatmul.mubr.msk.f32.vlgmr.msra.gmra.mxu0 %vm281_vm2, %v280_v19 }
 0x1a0   : > { %v353_v22 = vpop.f32.mrf.mxu0 }
 0x1a1   : > { %v354_v23 = vadd.f32 %v353_v22, %v273_v21 }
 0x1a2   : > { %v586_v24 = vpop.f32.mrf.mxu0 }
 0x1a3   : > { %v357_v25 = vmax.f32 %v354_v23, 0.0 }
 0x1a5   : > { %590 = vmatmul.mubr.msk.f32.vlgmr.msra.gmra.mxu1 %vm281_vm2, %v357_v25 }
 0x265   : > { %v432_v27 = vpop.f32.mrf.mxu1 }
 0x266   : > { %v433_v28 = vadd.f32 %v432_v27, %v359_v26 }
 0x267   : > { %v591_v29 = vpop.f32.mrf.mxu1 }
 0x268   : > { %v570_v30 = vmul.f32 -1.442695, %v433_v28 }
 0x26a   : > { %653 = vpow2.f32 %v570_v30 }
 0x277   : > { %v654_v31 = vpop.eup %653 }
 0x278   : > { %v439_v32 = vadd.f32 1.0, %v654_v31 }
 0x27a   : > { %655 = vrcp.f32 %v439_v32 }
 0x287   : > { %v656_v34 = vpop.eup %655 }
 0x288   : > { %v445_v35 = vrot.slane %v656_v34, %v444_v33 }
 0x28a   : > { %447 = vbcast.lane.b32.xlu1 %v445_v35, 256 }
 0x2fc   : > { %v448_v40 = vpop.permute.xlu1 %447 }
 0x2fd   : > { %v456_v41 = vrot.slane %v448_v40, %v455_v39 }
 0x2ff   : > { %v458_v42 = vmul.f32 %v456_v41, %v254_v0 }
 0x301   : > { %459 = vst [vmem:[%s253_s15] sm:$0xff] %v458_v42 }
 0x302   : > { %724 = shalt.err (!%p721_p3)
}
 0x303   : > { %s725_s9 = scalar_lea.hbm %s473_s28, 128  ;;  %s729_s30 = scalar_lea.hbm %s1007_s5, 256 }
 0x304   : > { %p726_p12 = scmp.ne.s32.totalorder %s473_s28, %s725_s9  ;;  %p730_p4 = scmp.lt.s32.totalorder %s473_s28, %s1007_s5 }
 0x305   : > { %p731_p6 = scmp.lt.s32.totalorder %s729_s30, %s725_s9 }
 0x306   : > { %p727_p5 = pnand %p726_p12, %p1024_p11 }
 0x307   : > { %p732_p8 = por %p731_p6, %p730_p4 }
 0x308   : > { %p728_p7 = pneg %p727_p5 }
 0x30a   : > { %p733_p9 = pnand %p732_p8, %p728_p7 }
 0x30c   : > { %736 = shalt.err (!%p733_p9)
}
 0x30d   : > { %598 = dma.vmem_to_hbm [thread:$0]  (%p1024_p11), %s476_s17, 128, %s473_s28, %s461_s10  }
 0x30e PF: > { %s487_s16 = sand.u32 1, %s767_s18   ;;  %p1025_p13 = scmp.ne.s32.totalorder %s1013_s25, 0 }
 0x30f   : > { %p1026_p10 = scmp.ge.s32.totalorder %s779_s21, 2  ;;  %s488_s15 = scalar_lea.sflag [#allocation4], %s487_s16 }
 0x311   : > { %p609_p1 = pnand %p1026_p10, %p1025_p13 }
 0x313   : > { %p610_p2 = pneg %p609_p1 }
 0x315   : > { %762 = dma.done.wait (%p610_p2), %s488_s15, 128  }
 0x316   : > { %764 = vsyncadd (%p610_p2), %s488_s15, 4294967168  ;;  %p19_p0 = scmp.ge.s32.totalorder %s865_s29, 4   ;;  %s1027_s18 = smov %s771_s19 }
 0x317   : > { %s1028_s19 = smov %s775_s20  ;;  %s1029_s20 = smov %s892_s12 }
 0x318   : > { %s1030_s21 = smov %s865_s29  ;;  %21 = sbr.rel (!%p19_p0) target bundleno = 6 (0x6), region = 89 }
 0x31d   :  { %493 = vsyncpa [#allocation3], 1 }
 0x31e   :  { %495 = vsyncpa [#allocation3 + $0x1], 1 }
 0x31f   :  { %496 = vsyncpa [#allocation6], 1 }
 0x320   :  { %497 = vsyncpa [#allocation4], 1 }
 0x321   :  { %499 = vsyncpa [#allocation4 + $0x1], 1 }

</bundles_post_ra>
